<compile_context>
chip_gen: v6e
topology: v6e:2x2x1
jax: 0.10.0
libtpu: 0.0.40
codegen_flags: <defaults>
</compile_context>

<pallas_src>
import functools

import jax
import jax.numpy as jnp
from jax.experimental import pallas as pl
from jax.experimental.pallas import tpu as pltpu


# ----------------------------------------------------------------------------- kernels

def _ce_kernel(has_cw, picked_ref, pred_ref, *rest):
    """Single-pass hard-label softmax CE; full class axis in one tile.

    picked_ref: (TN, 1) f32 — pred[i, label[i]] (gathered in the wrapper)
    pred_ref  : (TN, C) float — logits (kept in input dtype in VMEM)
    cw_ref    : (TN, 1) f32   — class_weight[label[i]] (only when has_cw)
    loss_ref  : (TN, 1) f32   — per-sample loss out
    """
    if has_cw:
        cw_ref, loss_ref = rest
    else:
        cw_ref = None
        (loss_ref,) = rest

    pred = pred_ref[...].astype(jnp.float32)       # f32 only in vreg/VMEM temporaries

    # numerically-stable logsumexp over the class (lane) axis
    m = jnp.max(pred, axis=-1, keepdims=True)
    lse = m + jnp.log(jnp.sum(jnp.exp(pred - m), axis=-1, keepdims=True))

    loss = lse - picked_ref[...]
    if has_cw:
        loss = cw_ref[...] * loss
    loss_ref[...] = loss.astype(loss_ref.dtype)


def _ce_kernel_chunked(has_cw, picked_ref, pred_ref, *rest):
    """Large-C path: online logsumexp over class chunks (last grid axis, 'arbitrary').

    picked_ref: (TN, 1) f32
    pred_ref  : (TN, BC) float  — one class chunk
    cw_ref    : (TN, 1) f32     — only when has_cw
    loss_ref  : (TN, 1) f32     — resident across the chunk axis, written at last j
    scratch   : m_sc, s_sc each (TN, 1) f32
    """
    if has_cw:
        cw_ref, loss_ref, m_sc, s_sc = rest
    else:
        cw_ref = None
        loss_ref, m_sc, s_sc = rest

    j = pl.program_id(1)
    n_chunks = pl.num_programs(1)

    @pl.when(j == 0)
    def _():
        m_sc[...] = jnp.full_like(m_sc, -jnp.inf)
        s_sc[...] = jnp.zeros_like(s_sc)

    pred = pred_ref[...].astype(jnp.float32)
    chunk_max = jnp.max(pred, axis=-1, keepdims=True)

    m_prev = m_sc[...]
    m_new = jnp.maximum(m_prev, chunk_max)
    # rescale previous sum-exp; exp(-inf - finite) == 0 handles the j==0 init cleanly
    s_sc[...] = (s_sc[...] * jnp.exp(m_prev - m_new)
                 + jnp.sum(jnp.exp(pred - m_new), axis=-1, keepdims=True))
    m_sc[...] = m_new

    @pl.when(j == n_chunks - 1)
    def _():
        loss = m_sc[...] + jnp.log(s_sc[...]) - picked_ref[...]
        if has_cw:
            loss = cw_ref[...] * loss
        loss_ref[...] = loss.astype(loss_ref.dtype)


# ----------------------------------------------------------------------------- wrapper

def _round_up(x, m):
    return (x + m - 1) // m * m


def _vmem_budgets():
    """(tile_budget_bytes, vmem_limit_bytes, chunk_c_cap) — generation aware."""
    cap = None
    try:
        info = pltpu.get_tpu_info()
        cap = getattr(info, "vmem_capacity_bytes", None)
    except Exception:
        cap = None
    mib = 1024 * 1024
    if cap is not None and cap >= 96 * mib:
        # v5e / v6e: 128 MiB physical VMEM
        return 48 * mib, 96 * mib, 32768
    if cap is not None:
        # v7x: 64 MiB physical VMEM
        return 28 * mib, 48 * mib, 32768
    # unknown backend: conservative (valid on every generation)
    return 16 * mib, 48 * mib, 16384


def _rows_for_tile(c_tile, itemsize, tile_budget):
    # per-row bytes: 2x double-buffered logits input + ~3 f32-sized temporaries
    per_row = c_tile * (2 * itemsize + 3 * 4) + 64
    rows = tile_budget // max(per_row, 1)
    return max(8, (rows // 8) * 8)


def cross_entropy_loss(cls_score,
                       label,
                       weight=None,
                       class_weight=None,
                       reduction='mean',
                       avg_factor=None,
                       loss_weight=1.0,
                       block_n=None,
                       block_c=None):
    """Forward pass of openmixup CrossEntropyLoss (default hard-label softmax CE path).

    cls_score: (N, C) float logits
    label    : (N,)   int   class indices
    weight   : (N,)   optional sample-wise weight
    class_weight: (C,) optional per-class weight
    """
    n, c = cls_score.shape
    itemsize = jnp.dtype(cls_score.dtype).itemsize
    has_cw = class_weight is not None

    tile_budget, vmem_limit, chunk_c_cap = _vmem_budgets()

    # ---- pick the tiling ----
    if block_c is not None:
        chunk_c = min(_round_up(block_c, 128), _round_up(c, 128))
        chunked = True
    elif _rows_for_tile(c, itemsize, tile_budget) < 64:
        # vocab-scale C: a full-C tile would force tiny row tiles -> chunk the class axis
        chunk_c = min(chunk_c_cap, _round_up(c, 128))
        chunked = True
    else:
        chunk_c = None
        chunked = False

    c_tile = chunk_c if chunked else c
    auto_block_n = block_n is None
    if auto_block_n:
        block_n = min(_rows_for_tile(c_tile, itemsize, tile_budget), 1024,
                      _round_up(n, 8))
        # keep >= 2 row tiles so the 'parallel' axis can shard across v7x's two TCs
        if n > 8:
            block_n = min(block_n, _round_up(-(-n // 2), 8))
    block_n = max(8, _round_up(block_n, 8))

    n_pad = _round_up(n, block_n)
    c_pad = _round_up(c, chunk_c) if chunked else c

    labels = jnp.asarray(label, jnp.int32)
    labels2d = labels.reshape(n, 1)

    # ---- hoisted gathers (O(N) XLA work; keeps the kernel purely logsumexp) ----
    picked = jnp.take_along_axis(cls_score, labels2d, axis=1).astype(jnp.float32)  # (N,1)
    if has_cw:
        cw_samp = jnp.asarray(class_weight, jnp.float32)[labels].reshape(n, 1)     # (N,1)

    # ---- pad inputs so block_n / block_c are a pure performance choice ----
    logits = cls_score
    if n_pad != n:
        logits = jnp.pad(logits, ((0, n_pad - n), (0, 0)))
        picked = jnp.pad(picked, ((0, n_pad - n), (0, 0)))
        if has_cw:
            cw_samp = jnp.pad(cw_samp, ((0, n_pad - n), (0, 0)))
    if c_pad != c:
        logits = jnp.pad(logits, ((0, 0), (0, c_pad - c)), constant_values=-jnp.inf)

    out_shape = jax.ShapeDtypeStruct((n_pad, 1), jnp.float32)

    if not chunked:
        # ---------------- single-pass path (full C per tile) ----------------
        kern = functools.partial(_ce_kernel, has_cw)
        in_specs = [
            pl.BlockSpec((block_n, 1), lambda i: (i, 0)),      # picked logits
            pl.BlockSpec((block_n, c_pad), lambda i: (i, 0)),  # logits
        ]
        args = [picked, logits]
        if has_cw:
            in_specs.append(pl.BlockSpec((block_n, 1), lambda i: (i, 0)))
            args.append(cw_samp)
        per_sample = pl.pallas_call(
            kern,
            out_shape=out_shape,
            grid_spec=pltpu.PrefetchScalarGridSpec(
                num_scalar_prefetch=0,
                grid=(n_pad // block_n,),
                in_specs=in_specs,
                out_specs=pl.BlockSpec((block_n, 1), lambda i: (i, 0)),
            ),
            compiler_params=pltpu.CompilerParams(
                dimension_semantics=("parallel",),
                vmem_limit_bytes=vmem_limit),
        )(*args)
    else:
        # ---------------- chunked-C path (online logsumexp) -----------------
        kern = functools.partial(_ce_kernel_chunked, has_cw)
        in_specs = [
            pl.BlockSpec((block_n, 1), lambda i, j: (i, 0)),        # picked logits
            pl.BlockSpec((block_n, chunk_c), lambda i, j: (i, j)),  # logits chunk
        ]
        args = [picked, logits]
        if has_cw:
            in_specs.append(pl.BlockSpec((block_n, 1), lambda i, j: (i, 0)))
            args.append(cw_samp)
        scratch = [pltpu.VMEM((block_n, 1), jnp.float32) for _ in range(2)]
        per_sample = pl.pallas_call(
            kern,
            out_shape=out_shape,
            grid_spec=pltpu.PrefetchScalarGridSpec(
                num_scalar_prefetch=0,
                grid=(n_pad // block_n, c_pad // chunk_c),
                in_specs=in_specs,
                out_specs=pl.BlockSpec((block_n, 1), lambda i, j: (i, 0)),
                scratch_shapes=scratch,
            ),
            compiler_params=pltpu.CompilerParams(
                dimension_semantics=("parallel", "arbitrary"),
                vmem_limit_bytes=vmem_limit),
        )(*args)

    loss = per_sample[:n, 0]                              # drop padded rows

    # weight_reduce_loss semantics (openmixup): sample weight then reduce.
    # Note: 'mean' with class_weight divides by N (openmixup behavior), not by the sum
    # of picked class weights (torch reduction='mean' behavior) — intentional.
    if weight is not None:
        loss = loss * jnp.asarray(weight, jnp.float32)
    if avg_factor is None:
        if reduction == 'mean':
            loss = jnp.mean(loss)
        elif reduction == 'sum':
            loss = jnp.sum(loss)
        elif reduction != 'none':
            raise ValueError(f"bad reduction {reduction}")
    else:
        if reduction == 'mean':
            loss = jnp.sum(loss) / avg_factor
        elif reduction != 'none':
            raise ValueError("avg_factor only supported with reduction='mean'/'none'")

    return loss_weight * loss
    # TODO(synk): use_sigmoid / use_soft / use_mix_decouple criterion branches and
    # torch-style ignore_index are not implemented (module default constructs the
    # plain hard-label cross_entropy).


# ----------------------------------------------------------------------------- tests

if __name__ == "__main__":
    key = jax.random.PRNGKey(0)
    k1, k2, k3, k4 = jax.random.split(key, 4)

    # --- test 1: default module config (single-pass path, no class_weight, f32) ---
    N, C = 8, 32
    cls_score = jax.random.normal(k1, (N, C), dtype=jnp.float32)
    label = jax.random.randint(k2, (N,), 0, C, dtype=jnp.int32)

    out = jax.block_until_ready(
        cross_entropy_loss(cls_score, label, reduction='mean', loss_weight=1.0))
    logp = jax.nn.log_softmax(cls_score, axis=-1)
    ref = jnp.mean(-logp[jnp.arange(N), label])
    assert jnp.allclose(out, ref, atol=1e-5, rtol=1e-5), (out, ref)

    # --- test 2: chunked-C path + class_weight + sample weight + N padding ---
    N2, C2 = 12, 384
    x2 = jax.random.normal(k3, (N2, C2), dtype=jnp.float32)
    y2 = jax.random.randint(k4, (N2,), 0, C2, dtype=jnp.int32)
    cw = jnp.linspace(0.5, 1.5, C2, dtype=jnp.float32)
    sw = jnp.linspace(0.2, 1.0, N2, dtype=jnp.float32)

    out2 = jax.block_until_ready(
        cross_entropy_loss(x2, y2, weight=sw, class_weight=cw,
                           reduction='mean', block_c=128))
    logp2 = jax.nn.log_softmax(x2, axis=-1)
    per2 = cw[y2] * (-logp2[jnp.arange(N2), y2])
    ref2 = jnp.mean(per2 * sw)
    assert jnp.allclose(out2, ref2, atol=1e-5, rtol=1e-5), (out2, ref2)

    # --- test 3: bf16 logits, reduction='none' (single-pass path) ---
    x3 = cls_score.astype(jnp.bfloat16)
    out3 = jax.block_until_ready(cross_entropy_loss(x3, label, reduction='none'))
    logp3 = jax.nn.log_softmax(x3.astype(jnp.float32), axis=-1)
    ref3 = -logp3[jnp.arange(N), label]
    assert jnp.allclose(out3, ref3, atol=1e-3, rtol=1e-3), (out3, ref3)

    print("KERNEL_OK")
</pallas_src>

<mosaic_0001>
module attributes {stable_mosaic.version = 11 : i64} {
  func.func @_ce_kernel(%arg0: i32, %arg1: memref<8x1xf32, #tpu.memory_space<vmem>>, %arg2: memref<8x32xf32, #tpu.memory_space<vmem>>, %arg3: memref<8x1xf32, #tpu.memory_space<vmem>>) attributes {dimension_semantics = [#tpu.dimension_semantics<parallel>], iteration_bounds = array<i64: 1>, scalar_prefetch = 0 : i64, scratch_operands = 0 : i64, tpu.core_type = #tpu.core_type<tc>, window_params = [{transform_indices = @transform_0, window_bounds = array<i64: 8, 1>}, {transform_indices = @transform_1, window_bounds = array<i64: 8, 32>}, {transform_indices = @transform_2, window_bounds = array<i64: 8, 1>}]} {
    %c0 = arith.constant 0 : index
    %c0_0 = arith.constant 0 : index
    %0 = vector.load %arg2[%c0, %c0_0] : memref<8x32xf32, #tpu.memory_space<vmem>>, vector<8x32xf32>
    %cst = arith.constant dense<0xFF800000> : vector<8xf32>
    %1 = vector.multi_reduction <maximumf>, %0, %cst [1] : vector<8x32xf32> to vector<8xf32>
    %2 = vector.shape_cast %1 : vector<8xf32> to vector<8x1xf32>
    %3 = vector.broadcast %2 : vector<8x1xf32> to vector<8x32xf32>
    %4 = arith.subf %0, %3 : vector<8x32xf32>
    %5 = math.exp %4 : vector<8x32xf32>
    %cst_1 = arith.constant dense<0.000000e+00> : vector<8xf32>
    %6 = vector.multi_reduction <add>, %5, %cst_1 [1] : vector<8x32xf32> to vector<8xf32>
    %7 = vector.shape_cast %6 : vector<8xf32> to vector<8x1xf32>
    %8 = math.log %7 : vector<8x1xf32>
    %9 = arith.addf %2, %8 : vector<8x1xf32>
    %c0_2 = arith.constant 0 : index
    %c0_3 = arith.constant 0 : index
    %10 = vector.load %arg1[%c0_2, %c0_3] : memref<8x1xf32, #tpu.memory_space<vmem>>, vector<8x1xf32>
    %11 = arith.subf %9, %10 : vector<8x1xf32>
    %c0_4 = arith.constant 0 : index
    %c0_5 = arith.constant 0 : index
    %12 = vector.load %arg3[%c0_4, %c0_5] : memref<8x1xf32, #tpu.memory_space<vmem>>, vector<8x1xf32>
    tpu.vector_store %arg3[%c0_4, %c0_5], %11 {strides = array<i32>} : memref<8x1xf32, #tpu.memory_space<vmem>>, vector<8x1xf32>,
    return
  }
  func.func @transform_0(%arg0: i32) -> (i32, i32) {
    %c0_i32 = arith.constant 0 : i32
    %c0_i32_0 = arith.constant 0 : i32
    return %arg0, %c0_i32 : i32, i32
  }
  func.func @transform_1(%arg0: i32) -> (i32, i32) {
    %c0_i32 = arith.constant 0 : i32
    %c0_i32_0 = arith.constant 0 : i32
    return %arg0, %c0_i32 : i32, i32
  }
  func.func @transform_2(%arg0: i32) -> (i32, i32) {
    %c0_i32 = arith.constant 0 : i32
    %c0_i32_0 = arith.constant 0 : i32
    return %arg0, %c0_i32 : i32, i32
  }
}

</mosaic_0001>

<bundles_post_ra>
// kernel: tpu_custom_call.1
= control target key start
LH: loop header
LB: loop body
LE: loop exit
PB: predicated region body
PF: predicated region fallthrough
CT: control target
= control target key end

     0   :  { %vm12_vm0 = vcmask 261120   ;;  %vm27_vm1 = vcmask 7168   ;;  %s61_s1 = inlined_call_operand.vmem [shape: f32[8,32], index: 1, kind: input, shape index: {}]   ;;  %s62_s0 = inlined_call_operand.vmem [shape: f32[8,1], index: 0, kind: input, shape index: {}]   ;;  %s63_s2 = inlined_call_operand.vmem [shape: f32[8,1], index: 2, kind: output, shape index: {}]  }
   0x1   :  { %v11_v0 = vld [vmem:[%s61_s1] sm:$0xff] }
   0x2   :  { %v13_v1 = vsel %vm12_vm0, %v11_v0, -inf  ;;  %v25_v10 = vld [vmem:[%s62_s0] sm:$0xff] }
   0x3   :  { %14 = vmax.xlane.f32.xlu0 %v13_v1 }
  0x8c   :  { %v15_v2 = vpop.xlane.xlu0 %14 }
  0x8d   :  { %v16_v3 = vsub.f32 %v11_v0, %v15_v2 }
  0x8f   :  { %v17_v4 = vmul.f32 1.442695, %v16_v3 }
  0x91   :  { %33 = vpow2.f32 %v17_v4 }
  0x9e   :  { %v34_v5 = vpop.eup %33 }
  0x9f   :  { %v19_v6 = vsel %vm12_vm0, %v34_v5, 0.0 }
  0xa0   :  { %20 = vadd.xlane.f32.xlu0 %v19_v6 }
 0x129   :  { %v21_v7 = vpop.xlane.xlu0 %20 }
 0x12a   :  { %35 = vlog2.f32 %v21_v7 }
 0x137   :  { %v36_v8 = vpop.eup %35 }
 0x138   :  { %v23_v9 = vmul.f32 0.6931472, %v36_v8 }
 0x13a   :  { %v24_v11 = vadd.f32 %v23_v9, %v15_v2 }
 0x13c   :  { %v26_v12 = vsub.f32 %v24_v11, %v25_v10 }
 0x13e   :  { %28 = vst.msk [vmem:[%s63_s2] sm:$0xff] %vm27_vm1, %v26_v12 }

</bundles_post_ra>
